<compile_context>
chip_gen: v6e
topology: v6e:2x2x1
jax: 0.10.0
libtpu: 0.0.40
codegen_flags: <defaults>
</compile_context>

<pallas_src>
import math
import functools

import jax
import jax.numpy as jnp
from jax.experimental import pallas as pl
from jax.experimental.pallas import tpu as pltpu


def _rfb_kernel(scale_ref, x_ref, ls_ref, w_ref, b_ref, o_ref,
                x_aug_ref, w_aug_ref, *, d, cache_w, bf16_epilogue):
    # scale_ref: (1,) SMEM          x_ref: (1, tn, d)   ls_ref: (1, d, 1)
    # w_ref:     (1, d, tu)         b_ref: (1, 1, tu)   o_ref:  (1, tn, tu)
    # x_aug_ref: (tn, d+1) VMEM     w_aug_ref: (d+1, tu) VMEM
    def build_w_aug():
        # Fold diag(1/lengthscale) into W and put bias in the extra row so the
        # bias-add rides the MXU (K slack is enormous at small d).
        inv_ls = 1.0 / ls_ref[0].astype(jnp.float32)            # (d, 1), exact
        w_scaled = w_ref[0].astype(jnp.float32) * inv_ls        # (d, tu)
        w_aug_ref[:d, :] = w_scaled.astype(w_aug_ref.dtype)
        w_aug_ref[d:, :] = b_ref[0].astype(w_aug_ref.dtype)     # bias row

    if cache_w:
        # Large-d path: W operand resident across the innermost n axis.
        @pl.when(pl.program_id(2) == 0)
        def _():
            build_w_aug()
    else:
        # Small-d path: d*tu VPU muls per step are negligible vs the cos work,
        # and dropping the i==0 ordering lets the n axis be "parallel" too.
        build_w_aug()

    # X operand with a trailing ones column (bias multiplier).
    x_aug_ref[:, :d] = x_ref[0].astype(x_aug_ref.dtype)
    x_aug_ref[:, d:] = jnp.ones((x_aug_ref.shape[0], 1), x_aug_ref.dtype)

    # MXU matmul, f32 accumulation; bias already included.
    proj = jnp.dot(x_aug_ref[...], w_aug_ref[...],
                   preferred_element_type=jnp.float32)          # (tn, tu)

    scale = scale_ref[0]                                        # SMEM scalar
    if bf16_epilogue:
        # v6e/v7x only (bf16 VPU); cheaper cos + half the store bytes, but the
        # phase precision will not hold a 1e-5-level match.
        out = scale.astype(jnp.bfloat16) * jnp.cos(proj.astype(jnp.bfloat16))
    else:
        out = scale * jnp.cos(proj)
    o_ref[0] = out.astype(o_ref.dtype)


def _pick_tile(total, multiple, cap):
    """Largest t <= cap that is a multiple of `multiple` and divides `total`;
    falls back to the full extent (always a legal Pallas block)."""
    best = None
    t = multiple
    while t <= min(total, cap):
        if total % t == 0:
            best = t
        t += multiple
    return best if best is not None else total


def random_fourier_basis(X, lengthscale, W, bias, outputscale, units,
                         *, tn_cap=1024, tu_cap=1024, cache_w=None,
                         bf16_epilogue=False):
    """X: [B, n, d]; lengthscale: [1, d] or [B, d]; W: [B, d, units];
    bias: [B, 1, units]; outputscale: python float or (traced) jnp scalar."""
    B, n, d = X.shape
    assert W.shape == (B, d, units), W.shape
    assert bias.shape == (B, 1, units), bias.shape

    # sqrt(2*outputscale/units) as an SMEM scalar: works for traced/learned
    # outputscale and avoids baking a compile-time constant.
    scale = jnp.sqrt(
        jnp.asarray(2.0 * outputscale / units, dtype=jnp.float32)).reshape(1)

    # Lengthscale as a (Bl, d, 1) column broadcasting against the (d, tu) W
    # tile. Supports shared [1, d] or per-batch [B, d].
    ls = jnp.asarray(lengthscale).reshape(-1, d)
    Bl = ls.shape[0]
    assert Bl in (1, B), Bl
    ls_col = ls[:, :, None].astype(jnp.float32)
    ls_map = (lambda b, u, i: (b, 0, 0)) if Bl == B else (lambda b, u, i: (0, 0, 0))

    out_itemsize = jnp.dtype(X.dtype).itemsize

    # units tiling: lane-dense tiles when units % 128 == 0; otherwise a single
    # full-extent units tile — no zero padding, no post-call slice copy, no 4x
    # wasted cos/store work (Mosaic masks only the lanes past `units`).
    if units % 128 == 0:
        tu = _pick_tile(units, 128, tu_cap)
    else:
        tu = units
        # Keep the (double-buffered) full-width output tile modest in VMEM for
        # large, non-128-aligned `units`.
        tn_cap = min(tn_cap,
                     max(8, ((4 << 20) // max(1, units * out_itemsize)) // 8 * 8))
    tn = _pick_tile(n, 8, tn_cap)

    # MXU operand dtype: keep bf16 only if both matmul inputs are bf16.
    # (Note: in that case the folded lengthscale/bias are also bf16-rounded —
    # not bit-identical to the reference, per the review's accuracy note.)
    mxu_dtype = (jnp.bfloat16
                 if (X.dtype == jnp.bfloat16 and W.dtype == jnp.bfloat16)
                 else jnp.float32)

    if cache_w is None:
        cache_w = d >= 256           # inline rescale is negligible at small d
    dims = ("parallel", "parallel", "arbitrary" if cache_w else "parallel")

    kernel = functools.partial(_rfb_kernel, d=d, cache_w=cache_w,
                               bf16_epilogue=bf16_epilogue)

    bytes_accessed = int(X.size * X.dtype.itemsize
                         + ls_col.size * 4
                         + W.size * W.dtype.itemsize
                         + bias.size * bias.dtype.itemsize
                         + B * n * units * out_itemsize)
    cost = pl.CostEstimate(flops=2 * B * n * (d + 1) * units,
                           transcendentals=B * n * units,
                           bytes_accessed=bytes_accessed)

    # Raise the scoped VMEM limit only if the double-buffered working set
    # actually needs it (it does not at the default tile caps).
    mxu_itemsize = jnp.dtype(mxu_dtype).itemsize
    est_vmem = (2 * (tn * d * X.dtype.itemsize + d * 4
                     + d * tu * W.dtype.itemsize + tu * bias.dtype.itemsize
                     + tn * tu * out_itemsize)
                + (tn * (d + 1) + (d + 1) * tu) * mxu_itemsize)
    vmem_limit = None
    if est_vmem > 12 * (1 << 20):
        vmem_limit = int(min(2 * est_vmem, 64 * (1 << 20)))

    out = pl.pallas_call(
        kernel,
        out_shape=jax.ShapeDtypeStruct((B, n, units), X.dtype),
        grid_spec=pltpu.PrefetchScalarGridSpec(
            num_scalar_prefetch=0,
            grid=(B, units // tu, n // tn),
            in_specs=[
                pl.BlockSpec(memory_space=pltpu.MemorySpace.SMEM),     # scale
                pl.BlockSpec((1, tn, d), lambda b, u, i: (b, i, 0)),   # X tile
                pl.BlockSpec((1, d, 1), ls_map),                       # 1/lengthscale col
                pl.BlockSpec((1, d, tu), lambda b, u, i: (b, 0, u)),   # W (resident over i)
                pl.BlockSpec((1, 1, tu), lambda b, u, i: (b, 0, u)),   # bias (resident over i)
            ],
            out_specs=pl.BlockSpec((1, tn, tu), lambda b, u, i: (b, i, u)),
            scratch_shapes=[pltpu.VMEM((tn, d + 1), mxu_dtype),        # X ++ ones
                            pltpu.VMEM((d + 1, tu), mxu_dtype)],       # W/ls ++ bias
        ),
        compiler_params=pltpu.CompilerParams(
            dimension_semantics=dims, vmem_limit_bytes=vmem_limit),
        cost_estimate=cost,
    )(scale, X, ls_col, W, bias)
    return out


def reference(X, lengthscale, W, bias, outputscale, units):
    ls = jnp.asarray(lengthscale).reshape(-1, 1, X.shape[-1])   # (Bl, 1, d)
    scaled = X / ls
    proj = jnp.einsum("bnd,bdu->bnu", scaled, W) + bias
    return jnp.sqrt(2.0 * outputscale / units) * jnp.cos(proj)


if __name__ == "__main__":
    # Small shapes consistent with the module's forward:
    # input_batch_shape = [2], n = 16 points, d = 8 features, units = 32 bases.
    B, n, d, units = 2, 16, 8, 32
    key = jax.random.PRNGKey(0)
    kx, kls, kw, kb = jax.random.split(key, 4)

    X = jax.random.normal(kx, (B, n, d), dtype=jnp.float32)

    # Deterministic "kernel hyperparameters" (ScaleKernel(RBFKernel(ard_num_dims=d))):
    lengthscale = jax.random.uniform(kls, (1, d), minval=0.5, maxval=1.5,
                                     dtype=jnp.float32)
    outputscale = jnp.float32(1.3)   # traced-scalar-friendly (SMEM path)

    # Layer parameters per the module's initializers (RBF base kernel):
    #   kernel_initializer -> randn(input_batch_shape + [d, units])
    #   bias_initializer   -> rand(input_batch_shape + [1, units]) * 2*pi
    W = jax.random.normal(kw, (B, d, units), dtype=jnp.float32)
    bias = jax.random.uniform(kb, (B, 1, units), dtype=jnp.float32) * (2.0 * math.pi)
    # TODO(synk): Matern base-kernel branch (Gamma-mixed normals) and the lazy
    # Layer build are init-time parameter sampling only; the forward kernel is
    # identical, so they are handled by the host driver, not the kernel.

    out = random_fourier_basis(X, lengthscale, W, bias, outputscale, units)
    out = jax.block_until_ready(out)

    ref = reference(X, lengthscale, W, bias, outputscale, units)
    assert out.shape == (B, n, units), out.shape
    assert jnp.allclose(out, ref, atol=2e-5, rtol=2e-5), (
        float(jnp.max(jnp.abs(out - ref))))

    print("KERNEL_OK")
</pallas_src>

<mosaic_0001>
module attributes {stable_mosaic.version = 11 : i64} {
  func.func @_rfb_kernel(%arg0: i32, %arg1: i32, %arg2: i32, %arg3: memref<1xf32, #tpu.memory_space<smem>>, %arg4: memref<1x16x8xf32, #tpu.memory_space<vmem>>, %arg5: memref<1x8x1xf32, #tpu.memory_space<vmem>>, %arg6: memref<1x8x32xf32, #tpu.memory_space<vmem>>, %arg7: memref<1x1x32xf32, #tpu.memory_space<vmem>>, %arg8: memref<1x16x32xf32, #tpu.memory_space<vmem>>, %arg9: memref<16x9xf32, #tpu.memory_space<vmem>>, %arg10: memref<9x32xf32, #tpu.memory_space<vmem>>) attributes {dimension_semantics = [#tpu.dimension_semantics<parallel>, #tpu.dimension_semantics<parallel>, #tpu.dimension_semantics<parallel>], iteration_bounds = array<i64: 2, 1, 1>, scalar_prefetch = 0 : i64, scratch_operands = 2 : i64, tpu.core_type = #tpu.core_type<tc>, window_params = [{transform_indices = @transform_0, window_bounds = array<i64: 1>}, {transform_indices = @transform_1, window_bounds = array<i64: 1, 16, 8>}, {pipeline_mode = #tpu.pipeline_mode<synchronous>, transform_indices = @transform_2, window_bounds = array<i64: 1, 8, 1>}, {transform_indices = @transform_3, window_bounds = array<i64: 1, 8, 32>}, {transform_indices = @transform_4, window_bounds = array<i64: 1, 1, 32>}, {transform_indices = @transform_5, window_bounds = array<i64: 1, 16, 32>}]} {
    %c0 = arith.constant 0 : index
    %c0_0 = arith.constant 0 : index
    %c0_1 = arith.constant 0 : index
    %0 = vector.load %arg5[%c0, %c0_0, %c0_1] : memref<1x8x1xf32, #tpu.memory_space<vmem>>, vector<1x8x1xf32>
    %1 = vector.shape_cast %0 : vector<1x8x1xf32> to vector<8x1xf32>
    %cst = arith.constant 1.000000e+00 : f32
    %2 = vector.broadcast %cst : f32 to vector<8x1xf32>
    %3 = arith.divf %2, %1 : vector<8x1xf32>
    %c0_2 = arith.constant 0 : index
    %c0_3 = arith.constant 0 : index
    %c0_4 = arith.constant 0 : index
    %4 = vector.load %arg6[%c0_2, %c0_3, %c0_4] : memref<1x8x32xf32, #tpu.memory_space<vmem>>, vector<1x8x32xf32>
    %5 = vector.shape_cast %4 : vector<1x8x32xf32> to vector<8x32xf32>
    %6 = vector.broadcast %3 : vector<8x1xf32> to vector<8x32xf32>
    %7 = arith.mulf %5, %6 : vector<8x32xf32>
    %c0_5 = arith.constant 0 : index
    %c0_6 = arith.constant 0 : index
    %8 = vector.load %arg10[%c0_5, %c0_6] : memref<9x32xf32, #tpu.memory_space<vmem>>, vector<8x32xf32>
    tpu.vector_store %arg10[%c0_5, %c0_6], %7 {strides = array<i32>} : memref<9x32xf32, #tpu.memory_space<vmem>>, vector<8x32xf32>,
    %c0_7 = arith.constant 0 : index
    %c0_8 = arith.constant 0 : index
    %c0_9 = arith.constant 0 : index
    %9 = vector.load %arg7[%c0_7, %c0_8, %c0_9] : memref<1x1x32xf32, #tpu.memory_space<vmem>>, vector<1x1x32xf32>
    %10 = vector.shape_cast %9 : vector<1x1x32xf32> to vector<1x32xf32>
    %c8 = arith.constant 8 : index
    %c0_10 = arith.constant 0 : index
    %11 = vector.load %arg10[%c8, %c0_10] : memref<9x32xf32, #tpu.memory_space<vmem>>, vector<1x32xf32>
    tpu.vector_store %arg10[%c8, %c0_10], %10 {strides = array<i32>} : memref<9x32xf32, #tpu.memory_space<vmem>>, vector<1x32xf32>,
    %c0_11 = arith.constant 0 : index
    %c0_12 = arith.constant 0 : index
    %c0_13 = arith.constant 0 : index
    %12 = vector.load %arg4[%c0_11, %c0_12, %c0_13] : memref<1x16x8xf32, #tpu.memory_space<vmem>>, vector<1x16x8xf32>
    %13 = vector.shape_cast %12 : vector<1x16x8xf32> to vector<16x8xf32>
    %c0_14 = arith.constant 0 : index
    %c0_15 = arith.constant 0 : index
    %14 = vector.load %arg9[%c0_14, %c0_15] : memref<16x9xf32, #tpu.memory_space<vmem>>, vector<16x8xf32>
    tpu.vector_store %arg9[%c0_14, %c0_15], %13 {strides = array<i32>} : memref<16x9xf32, #tpu.memory_space<vmem>>, vector<16x8xf32>,
    %cst_16 = arith.constant 1.000000e+00 : f32
    %15 = vector.broadcast %cst_16 : f32 to vector<16x1xf32>
    %c0_17 = arith.constant 0 : index
    %c8_18 = arith.constant 8 : index
    %16 = vector.load %arg9[%c0_17, %c8_18] : memref<16x9xf32, #tpu.memory_space<vmem>>, vector<16x1xf32>
    tpu.vector_store %arg9[%c0_17, %c8_18], %15 {strides = array<i32>} : memref<16x9xf32, #tpu.memory_space<vmem>>, vector<16x1xf32>,
    %c0_19 = arith.constant 0 : index
    %c0_20 = arith.constant 0 : index
    %17 = vector.load %arg9[%c0_19, %c0_20] : memref<16x9xf32, #tpu.memory_space<vmem>>, vector<16x9xf32>
    %c0_21 = arith.constant 0 : index
    %c0_22 = arith.constant 0 : index
    %18 = vector.load %arg10[%c0_21, %c0_22] : memref<9x32xf32, #tpu.memory_space<vmem>>, vector<9x32xf32>
    %cst_23 = arith.constant dense<0.000000e+00> : vector<16x32xf32>
    %19 = tpu.matmul %17, %18, %cst_23 {dimension_numbers = #tpu.dot_dimension_numbers<[1], [0], [0], [1], [0, 0, 1, 1], [], []>} : vector<16x9xf32>, vector<9x32xf32>, vector<16x32xf32> -> vector<16x32xf32>
    %c0_24 = arith.constant 0 : index
    %20 = memref.load %arg3[%c0_24] : memref<1xf32, #tpu.memory_space<smem>>
    %21 = math.cos %19 : vector<16x32xf32>
    %22 = vector.broadcast %20 : f32 to vector<16x32xf32>
    %23 = arith.mulf %22, %21 : vector<16x32xf32>
    %c0_25 = arith.constant 0 : index
    %c0_26 = arith.constant 0 : index
    %c0_27 = arith.constant 0 : index
    %24 = vector.load %arg8[%c0_25, %c0_26, %c0_27] : memref<1x16x32xf32, #tpu.memory_space<vmem>>, vector<1x16x32xf32>
    %25 = vector.shape_cast %24 : vector<1x16x32xf32> to vector<16x32xf32>
    %26 = vector.shape_cast %23 : vector<16x32xf32> to vector<1x16x32xf32>
    tpu.vector_store %arg8[%c0_25, %c0_26, %c0_27], %26 {strides = array<i32>} : memref<1x16x32xf32, #tpu.memory_space<vmem>>, vector<1x16x32xf32>,
    return
  }
  func.func @transform_0(%arg0: i32, %arg1: i32, %arg2: i32) -> i32 {
    %c0_i32 = arith.constant 0 : i32
    %c0_i32_0 = arith.constant 0 : i32
    return %c0_i32 : i32
  }
  func.func @transform_1(%arg0: i32, %arg1: i32, %arg2: i32) -> (i32, i32, i32) {
    %c0_i32 = arith.constant 0 : i32
    %c0_i32_0 = arith.constant 0 : i32
    return %arg0, %arg2, %c0_i32 : i32, i32, i32
  }
  func.func @transform_2(%arg0: i32, %arg1: i32, %arg2: i32) -> (i32, i32, i32) {
    %c0_i32 = arith.constant 0 : i32
    %c0_i32_0 = arith.constant 0 : i32
    %c0_i32_1 = arith.constant 0 : i32
    %c0_i32_2 = arith.constant 0 : i32
    return %c0_i32, %c0_i32_0, %c0_i32_1 : i32, i32, i32
  }
  func.func @transform_3(%arg0: i32, %arg1: i32, %arg2: i32) -> (i32, i32, i32) {
    %c0_i32 = arith.constant 0 : i32
    %c0_i32_0 = arith.constant 0 : i32
    return %arg0, %c0_i32, %arg1 : i32, i32, i32
  }
  func.func @transform_4(%arg0: i32, %arg1: i32, %arg2: i32) -> (i32, i32, i32) {
    %c0_i32 = arith.constant 0 : i32
    %c0_i32_0 = arith.constant 0 : i32
    return %arg0, %c0_i32, %arg1 : i32, i32, i32
  }
  func.func @transform_5(%arg0: i32, %arg1: i32, %arg2: i32) -> (i32, i32, i32) {
    %c0_i32 = arith.constant 0 : i32
    return %arg0, %arg2, %arg1 : i32, i32, i32
  }
}

</mosaic_0001>

<bundles_post_ra>
// kernel: tpu_custom_call.1
= control target key start
LH: loop header
LB: loop body
LE: loop exit
PB: predicated region body
PF: predicated region fallthrough
CT: control target
= control target key end

     0   :  { %s1232_s0 = inlined_call_operand.<no memory space> [shape: f32[1], index: 0, kind: input, shape index: {}]   ;;  %s1233_s1 = inlined_call_operand.vmem [shape: f32[2,16,8], index: 1, kind: input, shape index: {}]   ;;  %s1234_s2 = inlined_call_operand.vmem [shape: f32[1,8,1], index: 2, kind: input, shape index: {}]   ;;  %s1235_s3 = inlined_call_operand.vmem [shape: f32[2,8,32], index: 3, kind: input, shape index: {}]   ;;  %s1236_s4 = inlined_call_operand.vmem [shape: f32[2,1,32], index: 4, kind: input, shape index: {}]   ;;  %s1237_s5 = inlined_call_operand.hbm [shape: f32[2,16,32], index: 5, kind: output, shape index: {}]  }
   0x1   :  { %10 = sst [smem:[#allocation4]] %s1232_s0 }
   0x2   :  { %11 = vsyncpa [#allocation6], 0 }
   0x3   :  { %13 = vsyncpa [#allocation6 + $0x1], 0  ;;  %s1013_s20 = smov 0   ;;  %s1015_s21 = smov 0  }
   0x4   :  { %s1017_s22 = smov 0   ;;  %s1019_s23 = smov 0  }
   0x5   :  { %s1021_s24 = smov 0   ;;  %s1023_s25 = smov 0  }
   0x6 LB: > { %s769_s0 = sadd.s32 4294967295, %s967_s25   ;;  %s770_s26 = sadd.s32 4294967294, %s967_s25   ;;  %s967_s25 = sphi %s1023_s25, %s19_s25   ;;  %s963_s24 = sphi %s1021_s24, %s1248_s24   ;;  %s959_s23 = sphi %s1019_s23, %s1247_s23   ;;  %s955_s22 = sphi %s1017_s22, %s1246_s22   ;;  %s951_s21 = sphi %s1015_s21, %s1245_s21   ;;  %s947_s20 = sphi %s1013_s20, %s1244_s20  }
   0x7   : > { %s38_s27 = sadd.s32 1, %s963_s24  ;;  %s175_s28 = sadd.s32 1, %s955_s22 }
   0x8   : > { %p40_p0 = scmp.ge.s32.totalorder %s38_s27, 2  ;;  %p185_p1 = scmp.ne.s32.totalorder %s955_s22, %s951_s21 }
   0x9   : > { %p186_p2 = scmp.eq.s32.totalorder %s769_s0, 1  ;;  %p191_p3 = scmp.ne.s32.totalorder %s951_s21, %s947_s20 }
   0xa   : > { %s1250_s27 = smov (%p40_p0, %s38_s27), 0  ;;  %p192_p5 = scmp.eq.s32.totalorder %s770_s26, 1 }
   0xb   : > { %p1053_p4 = por %p186_p2, %p185_p1  ;;  %s168_s30 = ssub.s32 %s963_s24, %s1250_s27 }
   0xc   : > { %p773_p6 = scmp.ge.s32.totalorder %s967_s25, 1  ;;  %p173_p7 = scmp.eq.s32.totalorder %s168_s30, 0 }
   0xd   : > { %p1060_p8 = por %p192_p5, %p191_p3  ;;  %p248_p9 = scmp.lt.s32.totalorder %s967_s25, 3 }
   0xe   : > { %s1066_s7 = scalar_select %p173_p7, %s955_s22, %s175_s28  }
   0xf   : > { %p249_p10 = pnand %p773_p6, %p248_p9 }
  0x10   : > { %p294_p11 = scmp.lt.s32.totalorder (!%p249_p10), %s959_s23, 1  ;;  %s1150_s28 = sld [smem:[#allocation4]] (!%p249_p10) }
  0x11   : > { %252 = sbr.rel (%p249_p10) target bundleno = 474 (0x1da), region = 40  ;;  %s290_s30 = sand.u32 (!%p249_p10), 1, %s951_s21  }
  0x12   : > { %s774_s8 = sshll.u32 (!%p249_p10), %s290_s30, 4  ;;  %s977_s16 = smov (!%p249_p10), [#allocation5]  }
  0x13   : > { %s292_s9 = scalar_lea.vmem (!%p249_p10), [#allocation5], %s774_s8 }
  0x14   : > { %s659_s11 = sshll.u32 (!%p249_p10), %s292_s9, 4  ;;  %s1182_s11 = int_to_ptr.vmem [resolvable:$true] %s659_s11 }
  0x15   : > { %s891_s15 = scalar_lea.vmem (!%p249_p10), %s1182_s11, 256 }
  0x16   : > { %v317_v0 = vld [vmem:[%s1234_s2] sm:$0xff]  ;;  %v969_v1 = vmov 0   ;;  %s295_s10 = scalar_select %p294_p11, %s959_s23, 1  ;;  %vm330_vm0 = vcmask 253952   ;;  %vm334_vm1 = vcmask 64512   ;;  %vm337_vm2 = vcmask 72768  }
  0x17   : > { %880 = vset.pattern.permute.xlu0 %v969_v1  ;;  %881 = vrcp.f32 %v317_v0  ;;  %v970_v6 = vmov 1.0   ;;  %vm351_vm3 = vcmask 1040384   ;;  %vm344_vm4 = vcmask 72704   ;;  %p892_p12 = scmp.ne.s32.totalorder %s1182_s11, %s891_s15 }
  0x18   : > { %s315_s13 = scalar_lea.vmem %s1236_s4, %s295_s10  ;;  %s794_s14 = sshll.u32 %s295_s10, 4  ;;  %vm327_vm5 = vcmask 261120   ;;  %v971_v34 = vmov 683565275   ;;  %v972_v37 = vmov 2475754826  }
  0x19   : > { %v329_v2 = vld [vmem:[%s315_s13] sm:$0x1]  ;;  %s301_s17 = scalar_lea.vmem %s1233_s1, %s794_s14  ;;  %s777_s18 = sshll.u32 %s295_s10, 3  ;;  %v973_v39 = vmov 2131351028  }
  0x1a   : > { %331 = vst.msk [vmem:[#allocation3 + $0x8] sm:$0x1] %vm330_vm0, %v329_v2  ;;  %v332_v3 = vld [vmem:[%s301_s17] sm:$0xff]  ;;  %v333_v4 = vld [vmem:[%s301_s17 + $0x8] sm:$0xff]  ;;  %s309_s26 = scalar_lea.vmem %s1235_s3, %s777_s18  ;;  %v974_v41 = vmov 2102212464   ;;  %p893_p13 = pnand %p892_p12, %p1053_p4 }
  0x1b   : > { %335 = vst.msk [vmem:[#allocation2] sm:$0xff] %vm334_vm1, %v332_v3  ;;  %336 = vst.msk [vmem:[#allocation2 + $0x8] sm:$0xff] %vm334_vm1, %v333_v4  ;;  %v320_v9 = vld [vmem:[%s309_s26] sm:$0xff]  ;;  %v975_v43 = vmov 920167782   ;;  %s795_s10 = sshll.u32 %s959_s23, 8 }
  0x1c   : > { %338 = vst.msk [vmem:[#allocation2] sm:$0xff] %vm337_vm2, %v970_v6  ;;  %339 = vst.msk [vmem:[#allocation2 + $0x8] sm:$0xff] %vm337_vm2, %v970_v6  ;;  %v976_v50 = vmov 1326507024   ;;  %s1180_s14 = scalar_lea.hbm %s1237_s5, %s795_s10  ;;  %s1187_s23 = scalar_lea.sflag [#allocation6], %s290_s30 }
  0x1d   : > { %p894_p0 = pneg %p893_p13  ;;  %s895_s17 = sshll.u32 %s977_s16, 4  ;;  %s896_s17 = int_to_ptr.vmem [resolvable:$false] %s895_s17 }
  0x1e   : > { %s897_s18 = scalar_lea.vmem %s896_s17, 512  ;;  %p898_p1 = scmp.lt.s32.totalorder %s1182_s11, %s896_s17 }
  0x1f   : > { %p899_p2 = scmp.lt.s32.totalorder %s897_s18, %s891_s15 }
  0x21   : > { %v343_v7 = vld [vmem:[#allocation3 + $0x8] sm:$0x1]  ;;  %p900_p3 = por %p899_p2, %p898_p1 }
  0x22   : > { %800 = vmatprep.subr.msk.mxu0 %vm351_vm3, %v343_v7 }
  0x23   : > { %801 = vmatpush3.msk.msra.mxu0 %vm351_vm3, %v343_v7  ;;  %v340_v8 = vld [vmem:[#allocation2] sm:$0xff]  ;;  %v341_v13 = vld [vmem:[#allocation2 + $0x8] sm:$0xff]  ;;  %p901_p5 = pnand %p900_p3, %p894_p0 }
  0x24   : > { %v882_v5 = vpop.eup %881  ;;  %804 = vmatprep.mubr.msk.f32.mxu0 %vm344_vm4, %v340_v8 }
  0x25   : > { %323 = vperm.xlu0 %880, %v882_v5  }
  0xa0   : > { %v324_v10 = vpop.permute.xlu0 %323 }
  0xa1   : > { %v326_v11 = vmul.f32 %v324_v10, %v320_v9 }
  0xa3   : > { %328 = vst.msk [vmem:[#allocation3] sm:$0xff] %vm327_vm5, %v326_v11 }
  0xaa   : > { %v342_v12 = vld [vmem:[#allocation3] sm:$0xff] }
  0xab   : > { %802 = vmatprep.subr.mxu0 %v342_v12 }
  0xac   : > { %803 = vmatpush3.msra.mxu0 %v342_v12 }
  0xad   : > { %805 = vmatmul.mubr.msk.f32.vlgmr.msra.gmra.mxu0 %vm344_vm4, %v341_v13 }
 0x16d   : > { %v1083_v14 = vpop.f32.mrf.mxu0 }
 0x16e   : > { %v534_v15 = vand.u32 2147483647, %v1083_v14  ;;  %v537_v16 = vand.u32 2139095040, %v1083_v14  ;;  %vm536_vm4 = vcmp.lt.s32.totalorder %v1083_v14, 0 }
 0x16f   : > { %v1087_v17 = vpop.f32.mrf.mxu0 }
 0x170   : > { %v538_v18 = vshrl.u32 %v537_v16, 23  ;;  %v541_v19 = vand.u32 8388607, %v534_v15  ;;  %v434_v20 = vand.u32 2139095040, %v1087_v17  ;;  %v431_v22 = vand.u32 2147483647, %v1087_v17 }
 0x172   : > { %v785_v21 = vadd.s32 4294967169, %v538_v18  ;;  %v435_v23 = vshrl.u32 %v434_v20, 23  ;;  %v542_v25 = vor.u32 8388608, %v541_v19  ;;  %v438_v27 = vand.u32 8388607, %v431_v22 }
 0x174   : > { %v544_v24 = vadd.s32 1, %v785_v21  ;;  %v781_v26 = vadd.s32 4294967169, %v435_v23  ;;  %v1095_v32 = vshll.u32 %v542_v25, 8  ;;  %v439_v36 = vor.u32 8388608, %v438_v27 }
 0x176   : > { %vm545_vm6 = vcmp.gt.s32.totalorder %v544_v24, 0  ;;  %v441_v29 = vadd.s32 1, %v781_v26  ;;  %v479_v5 = vshll.u32 %v439_v36, 8 }
 0x177   : > { %v546_v28 = vsel %vm545_vm6, %v544_v24, 0  ;;  %vm1140_vm6 = vcmp.le.f32.partialorder %v534_v15, 0.7853982 }
 0x178   : > { %v547_v30 = vshrl.u32 %v546_v28, 5  ;;  %v548_v31 = vand.u32 31, %v546_v28  ;;  %vm442_vm7 = vcmp.gt.s32.totalorder %v441_v29, 0 }
 0x179   : > { %v443_v55 = vsel %vm442_vm7, %v441_v29, 0  ;;  %vm433_vm7 = vcmp.lt.s32.totalorder %v1087_v17, 0 }
 0x17a   : > { %v549_v33 = vsub.s32 32, %v548_v31  ;;  %v551_v35 = vshll.u32 %v971_v34, %v548_v31  ;;  %v554_v38 = vshll.u32 %v972_v37, %v548_v31  ;;  %v557_v40 = vshll.u32 %v973_v39, %v548_v31 }
 0x17b   : > { %v560_v42 = vshll.u32 %v974_v41, %v548_v31  ;;  %v563_v44 = vshll.u32 %v975_v43, %v548_v31  ;;  %vm566_vm8 = vcmp.lt.s32.totalorder %v547_v30, 1  ;;  %vm568_vm9 = vcmp.lt.s32.totalorder %v547_v30, 3 }
 0x17c   : > { %v552_v45 = vshrl.u32 %v972_v37, %v549_v33  ;;  %v555_v46 = vshrl.u32 %v973_v39, %v549_v33  ;;  %v558_v47 = vshrl.u32 %v974_v41, %v549_v33  ;;  %v550_v48 = vshrl.u32 %v971_v34, %v549_v33 }
 0x17d   : > { %v561_v49 = vshrl.u32 %v975_v43, %v549_v33  ;;  %v564_v51 = vshrl.u32 %v976_v50, %v549_v33  ;;  %vm569_vm10 = vcmp.lt.s32.totalorder %v547_v30, 4  ;;  %v445_v58 = vand.u32 31, %v443_v55 }
 0x17e   : > { %v553_v52 = vor.u32 %v552_v45, %v551_v35  ;;  %v556_v53 = vor.u32 %v555_v46, %v554_v38  ;;  %v559_v54 = vor.u32 %v558_v47, %v557_v40  ;;  %vm567_vm11 = vcmp.lt.s32.totalorder %v547_v30, 2 }
 0x17f   : > { %v562_v56 = vor.u32 %v561_v49, %v560_v42  ;;  %v565_v57 = vor.u32 %v564_v51, %v563_v44  ;;  %v446_v2 = vsub.s32 32, %v445_v58  ;;  %v444_v9 = vshrl.u32 %v443_v55, 5 }
 0x180   : > { %v570_v59 = vsel %vm566_vm8, %v550_v48, %v553_v52  ;;  %v571_v60 = vsel %vm569_vm10, %v559_v54, 2102212464  ;;  %v574_v61 = vsel %vm566_vm8, %v553_v52, %v556_v53  ;;  %v578_v62 = vsel %vm566_vm8, %v556_v53, %v559_v54 }
 0x181   : > { %v572_v63 = vsel %vm568_vm9, %v556_v53, %v571_v60  ;;  %v575_v0 = vsel %vm569_vm10, %v562_v56, 920167782  ;;  %v579_v1 = vsel %vm569_vm10, %v565_v57, 1326507024  ;;  %v448_v16 = vshll.u32 %v971_v34, %v445_v58 }
 0x182   : > { %v576_v3 = vsel %vm568_vm9, %v559_v54, %v575_v0  ;;  %v580_v4 = vsel %vm568_vm9, %v562_v56, %v579_v1  ;;  %v573_v6 = vsel %vm567_vm11, %v570_v59, %v572_v63  ;;  %v449_v18 = vshrl.u32 %v972_v37, %v446_v2 }
 0x183   : > { %v577_v7 = vsel %vm567_vm11, %v574_v61, %v576_v3  ;;  %v581_v8 = vsel %vm567_vm11, %v578_v62, %v580_v4  ;;  %v451_v19 = vshll.u32 %v972_v37, %v445_v58  ;;  %v452_v20 = vshrl.u32 %v973_v39, %v446_v2 }
 0x184   : > { %v1107_v10 = vmul.u32.u64.low %v1095_v32, %v581_v8  ;;  %v1108_v11 = vmul.u32.u64.high %v1095_v32, %v581_v8, %v1107_v10  ;;  %v1111_v12 = vmul.u32.u64.low %v1095_v32, %v577_v7  ;;  %v1112_v13 = vmul.u32.u64.high %v1095_v32, %v577_v7, %v1111_v12 }
 0x185   : > { %v454_v21 = vshll.u32 %v973_v39, %v445_v58  ;;  %v455_v23 = vshrl.u32 %v974_v41, %v446_v2  ;;  %v457_v24 = vshll.u32 %v974_v41, %v445_v58  ;;  %v458_v25 = vshrl.u32 %v975_v43, %v446_v2 }
 0x186   : > { %v450_v26 = vor.u32 %v449_v18, %v448_v16  ;;  %v453_v27 = vor.u32 %v452_v20, %v451_v19  ;;  %v460_v28 = vshll.u32 %v975_v43, %v445_v58  ;;  %v461_v29 = vshrl.u32 %v976_v50, %v446_v2 }
 0x187   : > { %v589_v30 = vmul.u32 %v1095_v32, %v573_v6  ;;  %vm591_vm12 = vc.u32 %v1108_v11, %v1111_v12  ;;  %v592_v31 = vadd.s32 1, %v1112_v13  ;;  %v456_v33 = vor.u32 %v455_v23, %v454_v21 }
 0x188   : > { %v447_v35 = vshrl.u32 %v971_v34, %v446_v2  ;;  %v459_v36 = vor.u32 %v458_v25, %v457_v24  ;;  %v462_v37 = vor.u32 %v461_v29, %v460_v28  ;;  %vm463_vm13 = vcmp.lt.s32.totalorder %v444_v9, 1 }
 0x189   : > { %v593_v38 = vsel %vm591_vm12, %v592_v31, %v1112_v13  ;;  %vm465_vm14 = vcmp.lt.s32.totalorder %v444_v9, 3  ;;  %vm466_vm15 = vcmp.lt.s32.totalorder %v444_v9, 4  ;;  %v471_v39 = vsel %vm463_vm13, %v450_v26, %v453_v27 }
 0x18a   : > { %v594_v40 = vadd.s32 %v593_v38, %v589_v30  ;;  %v468_v41 = vsel %vm466_vm15, %v456_v33, 2102212464  ;;  %v472_v42 = vsel %vm466_vm15, %v459_v36, 920167782  ;;  %v475_v32 = vsel %vm463_vm13, %v453_v27, %v456_v33 }
 0x18b   : > { %vm464_vm0 = vcmp.lt.s32.totalorder %v444_v9, 2  ;;  %v467_v43 = vsel %vm463_vm13, %v447_v35, %v450_v26  ;;  %v473_v44 = vsel %vm465_vm14, %v456_v33, %v472_v42  ;;  %v476_v45 = vsel %vm466_vm15, %v462_v37, 1326507024 }
 0x18c   : > { %v595_v46 = vadd.s32 536870912, %v594_v40  ;;  %v469_v47 = vsel %vm465_vm14, %v453_v27, %v468_v41  ;;  %v474_v48 = vsel %vm464_vm0, %v471_v39, %v473_v44  ;;  %v477_v34 = vsel %vm465_vm14, %v459_v36, %v476_v45 }
 0x18d   : > { %v478_v49 = vsel %vm464_vm0, %v475_v32, %v477_v34  ;;  %v1122_v50 = vmul.u32.u64.low %v479_v5, %v474_v48  ;;  %v1123_v51 = vmul.u32.u64.high %v479_v5, %v474_v48, %v1122_v50  ;;  %v470_v55 = vsel %vm464_vm0, %v467_v43, %v469_v47 }
 0x18e   : > { %v596_v52 = vshrl.u32 %v595_v46, 30  ;;  %v1125_v53 = vmul.u32.u64.low %v479_v5, %v478_v49  ;;  %v1126_v54 = vmul.u32.u64.high %v479_v5, %v478_v49, %v1125_v53  ;;  %v486_v59 = vmul.u32 %v479_v5, %v470_v55 }
 0x18f   : > { %v489_v57 = vadd.s32 1, %v1123_v51  ;;  %v590_v5 = vadd.s32 %v1111_v12, %v1108_v11  ;;  %vm1154_vm8 = vcmp.le.f32.partialorder %v431_v22, 0.7853982  ;;  %vm626_vm12 = vweird.f32 %v1083_v14 }
 0x190   : > { %v597_v56 = vshll.u32 %v596_v52, 30  ;;  %vm488_vm1 = vc.u32 %v1126_v54, %v1122_v50  ;;  %v487_v30 = vadd.s32 %v1122_v50, %v1126_v54  ;;  %v620_v42 = vsub.s32 4, %v596_v52 }
 0x191   : > { %v490_v60 = vsel %vm488_vm1, %v489_v57, %v1123_v51  ;;  %vm523_vm0 = vweird.f32 %v1087_v17 }
 0x192   : > { %v598_v58 = vsub.s32 %v594_v40, %v597_v56  ;;  %v491_v62 = vadd.s32 %v490_v60, %v486_v59  ;;  %v621_v45 = vsel %vm536_vm4, %v620_v42, %v596_v52 }
 0x193   : > { %v623_v47 = vsel %vm1140_vm6, 0, %v621_v45 }
 0x194   : > { %v600_v61 = vsub.s32 0, %v598_v58  ;;  %v492_v0 = vadd.s32 536870912, %v491_v62  ;;  %v627_v50 = vand.u32 3, %v623_v47 }
 0x196   : > { %v786_v63 = vmin.u32 %v600_v61, %v598_v58  ;;  %v1131_v2 = vshrl.u32 %v492_v0, 30  ;;  %vm632_vm9 = vcmp.eq.s32.totalorder %v627_v50, 2  ;;  %vm629_vm10 = vcmp.eq.s32.totalorder %v627_v50, 0 }
 0x197   : > { %vm628_vm11 = vcmp.lt.s32.totalorder %v627_v50, 2 }
 0x198   : > { %v602_v1 = vclz %v786_v63  ;;  %v494_v4 = vshll.u32 %v1131_v2, 30  ;;  %v517_v51 = vsub.s32 4, %v1131_v2 }
 0x19a   : > { %v787_v3 = vadd.s32 4294967294, %v602_v1  ;;  %v495_v7 = vsub.s32 %v491_v62, %v494_v4  ;;  %v518_v56 = vsel %vm433_vm7, %v517_v51, %v1131_v2 }
 0x19b   : > { %v520_v61 = vsel %vm1154_vm8, 0, %v518_v56 }
 0x19c   : > { %vm788_vm2 = vcmp.lt.s32.totalorder %v787_v3, 0  ;;  %v497_v10 = vsub.s32 0, %v495_v7  ;;  %v524_v63 = vand.u32 3, %v520_v61 }
 0x19d   : > { %v605_v6 = vsel %vm788_vm2, 0, %v787_v3 }
 0x19e   : > { %v606_v8 = vsub.s32 32, %v605_v6  ;;  %v610_v9 = vsub.s32 4294967266, %v605_v6  ;;  %v607_v13 = vshll.u32 %v598_v58, %v605_v6  ;;  %v782_v19 = vmin.u32 %v497_v10, %v495_v7 }
 0x19f   : > { %v637_v58 = vstv %s1150_s28  ;;  %vm529_vm13 = vcmp.eq.s32.totalorder %v524_v63, 2  ;;  %vm526_vm14 = vcmp.eq.s32.totalorder %v524_v63, 0  ;;  %vm525_vm15 = vcmp.lt.s32.totalorder %v524_v63, 2 }
 0x1a0   : > { %v608_v16 = vshrl.u32 %v590_v5, %v606_v8  ;;  %v611_v18 = vadd.s32 127, %v610_v9  ;;  %v499_v23 = vclz %v782_v19 }
 0x1a2   : > { %v609_v20 = vor.u32 %v608_v16, %v607_v13  ;;  %v612_v21 = vshll.u32 %v611_v18, 23  ;;  %v783_v25 = vadd.s32 4294967294, %v499_v23 }
 0x1a4   : > { %v613_v24 = vor.u32 4788187, %v612_v21  ;;  %v616_v27 = vcvt.s32.f32 %v609_v20  ;;  %vm784_vm3 = vcmp.lt.s32.totalorder %v783_v25, 0 }
 0x1a5   : > { %v502_v29 = vsel %vm784_vm3, 0, %v783_v25 }
 0x1a6   : > { %v614_v26 = vand.u32 2147483647, %v613_v24  ;;  %v503_v11 = vsub.s32 32, %v502_v29  ;;  %v507_v12 = vsub.s32 4294967266, %v502_v29  ;;  %v504_v33 = vshll.u32 %v495_v7, %v502_v29 }
 0x1a8   : > { %v617_v28 = vmul.f32 %v616_v27, %v614_v26  ;;  %v505_v35 = vshrl.u32 %v487_v30, %v503_v11  ;;  %v508_v36 = vadd.s32 127, %v507_v12 }
 0x1aa   : > { %v618_v31 = vxor.u32 2147483648, %v617_v28  ;;  %v506_v40 = vor.u32 %v505_v35, %v504_v33  ;;  %v509_v41 = vshll.u32 %v508_v36, 23 }
 0x1ac   : > { %v619_v38 = vsel %vm536_vm4, %v618_v31, %v617_v28  ;;  %v510_v32 = vor.u32 4788187, %v509_v41  ;;  %v513_v44 = vcvt.s32.f32 %v506_v40 }
 0x1ad   : > { %v622_v39 = vsel %vm1140_vm6, %v1083_v14, %v619_v38 }
 0x1ae   : > { %883 = vcosq.f32 %v622_v39  ;;  %v511_v43 = vand.u32 2147483647, %v510_v32 }
 0x1af   : > { %885 = vsinq.f32 %v622_v39 }
 0x1b0   : > { %v514_v46 = vmul.f32 %v513_v44, %v511_v43 }
 0x1b2   : > { %v515_v15 = vxor.u32 2147483648, %v514_v46 }
 0x1b4   : > { %v516_v34 = vsel %vm433_vm7, %v515_v15, %v514_v46 }
 0x1b5   : > { %v519_v49 = vsel %vm1154_vm8, %v1087_v17, %v516_v34 }
 0x1b6   : > { %887 = vcosq.f32 %v519_v49 }
 0x1b7   : > { %889 = vsinq.f32 %v519_v49 }
 0x1bb   : > { %v884_v52 = vpop.eup %883 }
 0x1bc   : > { %v886_v22 = vpop.eup %885  ;;  %v633_v53 = vxor.u32 2147483648, %v884_v52 }
 0x1bd   : > { %v630_v54 = vxor.u32 2147483648, %v886_v22 }
 0x1be   : > { %v634_v55 = vsel %vm632_vm9, %v633_v53, %v886_v22 }
 0x1bf   : > { %v631_v57 = vsel %vm629_vm10, %v884_v52, %v630_v54 }
 0x1c0   : > { %v635_v59 = vsel %vm628_vm11, %v631_v57, %v634_v55 }
 0x1c1   : > { %v636_v60 = vsel %vm626_vm12, nan, %v635_v59 }
 0x1c2   : > { %v639_v62 = vmul.f32 %v637_v58, %v636_v60 }
 0x1c3   : > { %v888_v0 = vpop.eup %887 }
 0x1c4   : > { %641 = vst.msk [vmem:[%s292_s9 + $0x8] sm:$0xff] %vm327_vm5, %v639_v62  ;;  %v890_v1 = vpop.eup %889  ;;  %v530_v2 = vxor.u32 2147483648, %v888_v0 }
 0x1c5   : > { %v527_v3 = vxor.u32 2147483648, %v890_v1 }
 0x1c6   : > { %v531_v4 = vsel %vm529_vm13, %v530_v2, %v890_v1 }
 0x1c7   : > { %v528_v14 = vsel %vm526_vm14, %v888_v0, %v527_v3 }
 0x1c8   : > { %v532_v6 = vsel %vm525_vm15, %v528_v14, %v531_v4 }
 0x1c9   : > { %v533_v7 = vsel %vm523_vm0, nan, %v532_v6 }
 0x1ca   : > { %v638_v5 = vmul.f32 %v637_v58, %v533_v7 }
 0x1cc   : > { %640 = vst.msk [vmem:[%s292_s9] sm:$0xff] %vm327_vm5, %v638_v5 }
 0x1cd   : > { %904 = shalt.err (!%p901_p5)
}
 0x1ce   : > { %s905_s19 = scalar_lea.hbm %s1180_s14, 256  ;;  %s909_s28 = scalar_lea.hbm %s1237_s5, 512 }
 0x1cf   : > { %p906_p6 = scmp.ne.s32.totalorder %s1180_s14, %s905_s19  ;;  %p910_p10 = scmp.lt.s32.totalorder %s1180_s14, %s1237_s5 }
 0x1d0   : > { %p911_p11 = scmp.lt.s32.totalorder %s909_s28, %s905_s19 }
 0x1d1   : > { %p907_p7 = pnand %p906_p6, %p1053_p4 }
 0x1d2   : > { %p912_p12 = por %p911_p11, %p910_p10 }
 0x1d3   : > { %p908_p9 = pneg %p907_p7 }
 0x1d5   : > { %p913_p13 = pnand %p912_p12, %p908_p9 }
 0x1d7   : > { %916 = shalt.err (!%p913_p13)
}
 0x1d8   : > { %s978_s9 = smov 128   ;;  %s979_s10 = smov 8  }
 0x1d9   : > { %815 = dma.vmem_to_hbm [thread:$0]  (%p1053_p4), %s1182_s11, 256, %s1180_s14, %s1187_s23, %s978_s9, %s978_s9, %s979_s10  }
 0x1da PF: > { %p821_p0 = scmp.ge.s32.totalorder %s967_s25, 2  ;;  %s674_s12 = sand.u32 1, %s947_s20  }
 0x1db   : > { %s675_s13 = scalar_lea.sflag [#allocation6], %s674_s12 }
 0x1dc   : > { %p818_p1 = pnand %p821_p0, %p1060_p8 }
 0x1de   : > { %p819_p2 = pneg %p818_p1 }
 0x1e0   : > { %942 = dma.done.wait (%p819_p2), %s675_s13, 256  }
 0x1e1   : > { %944 = vsyncadd (%p819_p2), %s675_s13, 4294967040  ;;  %s19_s25 = sadd.s32 1, %s967_s25   ;;  %s1244_s20 = smov %s951_s21 }
 0x1e2   : > { %p16_p3 = scmp.ge.s32.totalorder %s19_s25, 4   ;;  %s1245_s21 = smov %s955_s22 }
 0x1e3   : > { %s1246_s22 = smov %s1066_s7  ;;  %s1247_s23 = smov %s963_s24 }
 0x1e4   : > { %s1248_s24 = smov %s1250_s27  ;;  %18 = sbr.rel (!%p16_p3) target bundleno = 6 (0x6), region = 81 }
 0x1e9   :  { %680 = vsyncpa [#allocation6], 1 }
 0x1ea   :  { %682 = vsyncpa [#allocation6 + $0x1], 1 }

</bundles_post_ra>
